<compile_context>
chip_gen: v7x
topology: tpu7x:2x2x1
jax: 0.10.0
libtpu: 0.0.40
codegen_flags: <defaults>
</compile_context>

<pallas_src>
import math
from typing import NamedTuple

import jax
import jax.numpy as jnp
from jax.experimental import pallas as pl
from jax.experimental.pallas import tpu as pltpu


def _round_up(a: int, b: int) -> int:
    return (a + b - 1) // b * b


def _largest_div_tile(padded: int, max_tile: int) -> int:
    """Largest multiple of 128 that divides `padded` (itself a 128-multiple)
    and is <= max_tile. Avoids any call-time re-padding of the weight."""
    t = min(max_tile, padded)
    t -= t % 128
    while t >= 128:
        if padded % t == 0:
            return t
        t -= 128
    return 128


# ---------------------------------------------------------------------------
# Kernels
# ---------------------------------------------------------------------------
def _linear_kernel_noacc(x_ref, w_ref, b_ref, o_ref):
    """Single-K-tile path: dot + bias straight to the output tile."""
    acc = jnp.dot(x_ref[...], w_ref[...], preferred_element_type=jnp.float32)
    o_ref[...] = (acc + b_ref[...]).astype(o_ref.dtype)


def _linear_kernel_acc(x_ref, w_ref, b_ref, o_ref, acc_ref):
    """Multi-K-tile path: f32 VMEM accumulator, K is the innermost grid axis."""
    k = pl.program_id(2)

    @pl.when(k == 0)
    def _init():
        acc_ref[...] = jnp.zeros_like(acc_ref)

    acc_ref[...] += jnp.dot(
        x_ref[...], w_ref[...], preferred_element_type=jnp.float32
    )

    @pl.when(k == pl.num_programs(2) - 1)
    def _finalize():
        o_ref[...] = (acc_ref[...] + b_ref[...]).astype(o_ref.dtype)


# ---------------------------------------------------------------------------
# Parameters (weight pre-transposed, pre-padded, pre-cast at init time)
# ---------------------------------------------------------------------------
class LinearNormParams(NamedTuple):
    weight_t: jax.Array   # (kp, np) padded to 128-multiples, compute dtype
    bias: jax.Array       # (1, np)  f32, zero-padded past out_dim
    in_dim: int
    out_dim: int


def pack_linear_norm_params(weight_t, bias, compute_dtype=jnp.bfloat16):
    """Pad W to 128-multiples and cast once; keep bias in f32 for the epilogue."""
    in_dim, out_dim = weight_t.shape
    kp = _round_up(in_dim, 128)
    np_ = _round_up(out_dim, 128)
    w = jnp.pad(weight_t, ((0, kp - in_dim), (0, np_ - out_dim)))
    w = w.astype(compute_dtype)
    b = bias.reshape(1, out_dim).astype(jnp.float32)
    b = jnp.pad(b, ((0, 0), (0, np_ - out_dim)))
    return LinearNormParams(weight_t=w, bias=b, in_dim=in_dim, out_dim=out_dim)


_GAINS = {"linear": 1.0, "sigmoid": 1.0, "tanh": 5.0 / 3.0, "relu": math.sqrt(2.0)}


def make_linear_norm_params(key, in_dim, out_dim, w_init_gain="linear",
                            compute_dtype=jnp.bfloat16):
    """xavier_uniform_ weight (pre-transposed) + torch default bias init.
    Returns (packed_params, raw_f32_weight_t, raw_f32_bias) — raw copies are
    kept only for reference checks."""
    gain = _GAINS[w_init_gain]
    limit = gain * math.sqrt(6.0 / (in_dim + out_dim))
    k_w, k_b = jax.random.split(key)
    weight_t = jax.random.uniform(
        k_w, (in_dim, out_dim), minval=-limit, maxval=limit, dtype=jnp.float32
    )
    b_limit = 1.0 / math.sqrt(in_dim)
    bias = jax.random.uniform(
        k_b, (out_dim,), minval=-b_limit, maxval=b_limit, dtype=jnp.float32
    )
    return pack_linear_norm_params(weight_t, bias, compute_dtype), weight_t, bias


# ---------------------------------------------------------------------------
# Forward
# ---------------------------------------------------------------------------
def linear_norm_forward(
    x,
    params: LinearNormParams,
    *,
    compute_dtype=jnp.bfloat16,
    tm: int = 512,
    tn: int = 512,
    tk: int = 1024,
    collapse_threshold: int = 2048,
):
    """y = x @ W_t + b, matching torch.nn.Linear(in_dim, out_dim)."""
    *lead, in_dim = x.shape
    assert in_dim == params.in_dim, (in_dim, params.in_dim)
    out_dim = params.out_dim
    w = params.weight_t                       # (kp, np_) compute_dtype, padded
    b = params.bias                           # (1, np_)  f32, padded
    kp, np_ = w.shape

    m = math.prod(lead) if lead else 1
    out_dtype = x.dtype

    # ---- tile selection -------------------------------------------------
    sub = 16 if compute_dtype == jnp.bfloat16 else 8   # sublane packing

    # K: collapse to a single tile whenever it fits (no accumulator needed).
    tk_e = kp if kp <= max(tk, collapse_threshold) else _largest_div_tile(kp, tk)
    # N: collapse so x is streamed from HBM exactly once when out_dim is modest.
    tn_e = np_ if np_ <= max(tn, collapse_threshold) else _largest_div_tile(np_, tn)

    # M: clamp to the problem, sublane-aligned.
    tm_e = min(tm, _round_up(m, sub))
    # Keep >= 2 M tiles when the grid would otherwise be 1x1 and there is
    # enough work — lets both v7x TensorCores participate (cheap elsewhere).
    if (np_ // tn_e) == 1 and m >= 512 and m <= tm_e:
        tm_e = _round_up((m + 1) // 2, sub)
    mp = _round_up(m, tm_e)

    grid_m, grid_n, grid_k = mp // tm_e, np_ // tn_e, kp // tk_e

    # ---- activation prep: single cast (if needed) + cheap M/K pad --------
    x2d = x.reshape(m, in_dim)
    if x2d.dtype != compute_dtype:
        x2d = x2d.astype(compute_dtype)       # fused with the pad under jit
    if (mp, kp) != (m, in_dim):
        x2d = jnp.pad(x2d, ((0, mp - m), (0, kp - in_dim)))

    # ---- generation-aware VMEM limit -------------------------------------
    try:
        phys_vmem = int(pltpu.get_tpu_info().vmem_capacity_bytes)
    except Exception:
        phys_vmem = 128 * 1024 * 1024
    vmem_limit = min(96 * 1024 * 1024,
                     max(32 * 1024 * 1024, (phys_vmem * 3) // 4))

    # ---- advisory cost estimate ------------------------------------------
    in_bytes = jnp.dtype(compute_dtype).itemsize
    out_bytes = jnp.dtype(out_dtype).itemsize
    cost = pl.CostEstimate(
        flops=2 * m * in_dim * out_dim,
        transcendentals=0,
        bytes_accessed=(mp * kp * in_bytes * grid_n      # x, re-read per N tile
                        + kp * np_ * in_bytes * grid_m   # W, re-read per M tile
                        + mp * np_ * out_bytes           # output
                        + np_ * 4),                      # bias
    )

    # ---- pallas_call ------------------------------------------------------
    if grid_k == 1:
        out = pl.pallas_call(
            _linear_kernel_noacc,
            out_shape=jax.ShapeDtypeStruct((mp, np_), out_dtype),
            grid_spec=pltpu.PrefetchScalarGridSpec(
                num_scalar_prefetch=0,
                grid=(grid_m, grid_n),
                in_specs=[
                    pl.BlockSpec((tm_e, tk_e), lambda i, j: (i, 0)),   # x
                    pl.BlockSpec((tk_e, tn_e), lambda i, j: (0, j)),   # W
                    pl.BlockSpec((1, tn_e), lambda i, j: (0, j)),      # bias
                ],
                out_specs=pl.BlockSpec((tm_e, tn_e), lambda i, j: (i, j)),
            ),
            compiler_params=pltpu.CompilerParams(
                dimension_semantics=("parallel", "parallel"),
                vmem_limit_bytes=vmem_limit,
            ),
            cost_estimate=cost,
        )(x2d, w, b)
    else:
        out = pl.pallas_call(
            _linear_kernel_acc,
            out_shape=jax.ShapeDtypeStruct((mp, np_), out_dtype),
            grid_spec=pltpu.PrefetchScalarGridSpec(
                num_scalar_prefetch=0,
                grid=(grid_m, grid_n, grid_k),
                in_specs=[
                    pl.BlockSpec((tm_e, tk_e), lambda i, j, k: (i, k)),   # x
                    pl.BlockSpec((tk_e, tn_e), lambda i, j, k: (k, j)),   # W
                    pl.BlockSpec((1, tn_e), lambda i, j, k: (0, j)),      # bias
                ],
                out_specs=pl.BlockSpec((tm_e, tn_e), lambda i, j, k: (i, j)),
                scratch_shapes=[pltpu.VMEM((tm_e, tn_e), jnp.float32)],
            ),
            compiler_params=pltpu.CompilerParams(
                dimension_semantics=("parallel", "parallel", "arbitrary"),
                vmem_limit_bytes=vmem_limit,
            ),
            cost_estimate=cost,
        )(x2d, w, b)

    out = out[:m, :out_dim]
    return out.reshape(*lead, out_dim)


# ---------------------------------------------------------------------------
# Demo / self-test
# ---------------------------------------------------------------------------
if __name__ == "__main__":
    key = jax.random.PRNGKey(0)
    k_x, k_p, k_x2, k_p2 = jax.random.split(key, 4)

    # --- case 1: tiny shapes (pads M/K/N) ---------------------------------
    batch, seq, in_dim, out_dim = 2, 8, 32, 32
    x = jax.random.normal(k_x, (batch, seq, in_dim), dtype=jnp.float32)
    params, weight_t_f32, bias_f32 = make_linear_norm_params(k_p, in_dim, out_dim)

    fwd = jax.jit(lambda xx: linear_norm_forward(xx, params))
    y = jax.block_until_ready(fwd(x))
    assert y.shape == (batch, seq, out_dim)
    assert y.dtype == x.dtype

    # Reference 1: same bf16-input / f32-accumulate math as the kernel (tight).
    y_ref_bf16 = (
        jnp.dot(x.astype(jnp.bfloat16), weight_t_f32.astype(jnp.bfloat16),
                preferred_element_type=jnp.float32) + bias_f32
    ).astype(x.dtype)
    assert jnp.allclose(y, y_ref_bf16, atol=1e-3, rtol=1e-3)

    # Reference 2: full-f32 math (loose, bounds the bf16 input-rounding error).
    y_ref_f32 = x @ weight_t_f32 + bias_f32
    assert jnp.allclose(y, y_ref_f32, atol=5e-2, rtol=5e-2)

    # --- case 2: 128-multiple dims, padding-free collapsed-N/K fast path ---
    batch2, seq2, in2, out2 = 3, 5, 256, 128
    x2 = jax.random.normal(k_x2, (batch2, seq2, in2), dtype=jnp.float32)
    params2, w2_f32, b2_f32 = make_linear_norm_params(k_p2, in2, out2, w_init_gain="tanh")

    y2 = jax.block_until_ready(
        jax.jit(lambda xx: linear_norm_forward(xx, params2))(x2)
    )
    assert y2.shape == (batch2, seq2, out2)
    y2_ref = (
        jnp.dot(x2.astype(jnp.bfloat16), w2_f32.astype(jnp.bfloat16),
                preferred_element_type=jnp.float32) + b2_f32
    ).astype(x2.dtype)
    assert jnp.allclose(y2, y2_ref, atol=1e-3, rtol=1e-3)

    print("KERNEL_OK")
</pallas_src>

<mosaic_0001>
module attributes {stable_mosaic.version = 11 : i64} {
  func.func @_linear_kernel_noacc(%arg0: i32, %arg1: i32, %arg2: memref<16x128xbf16, #tpu.memory_space<vmem>>, %arg3: memref<128x128xbf16, #tpu.memory_space<vmem>>, %arg4: memref<1x128xf32, #tpu.memory_space<vmem>>, %arg5: memref<16x128xf32, #tpu.memory_space<vmem>>) attributes {dimension_semantics = [#tpu.dimension_semantics<parallel>, #tpu.dimension_semantics<parallel>], iteration_bounds = array<i64: 1, 1>, scalar_prefetch = 0 : i64, scratch_operands = 0 : i64, tpu.core_type = #tpu.core_type<tc>, window_params = [{transform_indices = @transform_0, window_bounds = array<i64: 16, 128>}, {transform_indices = @transform_1, window_bounds = array<i64: 128, 128>}, {transform_indices = @transform_2, window_bounds = array<i64: 1, 128>}, {transform_indices = @transform_3, window_bounds = array<i64: 16, 128>}]} {
    %c0 = arith.constant 0 : index
    %c0_0 = arith.constant 0 : index
    %0 = vector.load %arg2[%c0, %c0_0] : memref<16x128xbf16, #tpu.memory_space<vmem>>, vector<16x128xbf16>
    %c0_1 = arith.constant 0 : index
    %c0_2 = arith.constant 0 : index
    %1 = vector.load %arg3[%c0_1, %c0_2] : memref<128x128xbf16, #tpu.memory_space<vmem>>, vector<128x128xbf16>
    %cst = arith.constant dense<0.000000e+00> : vector<16x128xf32>
    %2 = tpu.matmul %0, %1, %cst {dimension_numbers = #tpu.dot_dimension_numbers<[1], [0], [0], [1], [0, 0, 1, 1], [], []>} : vector<16x128xbf16>, vector<128x128xbf16>, vector<16x128xf32> -> vector<16x128xf32>
    %c0_3 = arith.constant 0 : index
    %c0_4 = arith.constant 0 : index
    %3 = vector.load %arg4[%c0_3, %c0_4] : memref<1x128xf32, #tpu.memory_space<vmem>>, vector<1x128xf32>
    %4 = vector.broadcast %3 : vector<1x128xf32> to vector<16x128xf32>
    %5 = arith.addf %2, %4 : vector<16x128xf32>
    %c0_5 = arith.constant 0 : index
    %c0_6 = arith.constant 0 : index
    %6 = vector.load %arg5[%c0_5, %c0_6] : memref<16x128xf32, #tpu.memory_space<vmem>>, vector<16x128xf32>
    tpu.vector_store %arg5[%c0_5, %c0_6], %5 {strides = array<i32>} : memref<16x128xf32, #tpu.memory_space<vmem>>, vector<16x128xf32>,
    return
  }
  func.func @transform_0(%arg0: i32, %arg1: i32) -> (i32, i32) {
    %c0_i32 = arith.constant 0 : i32
    %c0_i32_0 = arith.constant 0 : i32
    return %arg0, %c0_i32 : i32, i32
  }
  func.func @transform_1(%arg0: i32, %arg1: i32) -> (i32, i32) {
    %c0_i32 = arith.constant 0 : i32
    %c0_i32_0 = arith.constant 0 : i32
    return %c0_i32, %arg1 : i32, i32
  }
  func.func @transform_2(%arg0: i32, %arg1: i32) -> (i32, i32) {
    %c0_i32 = arith.constant 0 : i32
    %c0_i32_0 = arith.constant 0 : i32
    return %c0_i32, %arg1 : i32, i32
  }
  func.func @transform_3(%arg0: i32, %arg1: i32) -> (i32, i32) {
    %c0_i32 = arith.constant 0 : i32
    return %arg0, %arg1 : i32, i32
  }
}

</mosaic_0001>

<bundles_post_ra>
// kernel: _lambda_.1
= control target key start
LH: loop header
LB: loop body
LE: loop exit
PB: predicated region body
PF: predicated region fallthrough
CT: control target
= control target key end

     0   :  { %8 = vsyncpa [#allocation3], 0  ;;  %s432_s0 = inlined_call_operand.hbm [shape: bf16[16,128], index: 0, kind: input, shape index: {}]   ;;  %s433_s1 = inlined_call_operand.hbm [shape: bf16[128,128], index: 1, kind: input, shape index: {}]   ;;  %s434_s2 = inlined_call_operand.hbm [shape: f32[1,128], index: 2, kind: input, shape index: {}]   ;;  %s435_s3 = inlined_call_operand.hbm [shape: f32[16,128], index: 3, kind: output, shape index: {}]  }
   0x1   :  { %9 = vsyncpa [#allocation6], 0 }
   0x2   :  { %10 = vsyncpa [#allocation4], 0  ;;  %s347_s12 = smov [#allocation5]   ;;  %s348_s14 = smov [#allocation2]  }
   0x3   :  { %s28_s13 = sshll.u32 %s347_s12, 4  ;;  %s16_s15 = sshll.u32 %s348_s14, 4  ;;  %s29_s13 = int_to_ptr.vmem [resolvable:$true] %s28_s13  ;;  %s377_s15 = int_to_ptr.vmem [resolvable:$true] %s16_s15 }
   0x4   :  { %s253_s18 = scalar_lea.hbm %s433_s1, 1024 }
   0x5   :  { %p254_p0 = scmp.ne.s32.totalorder %s433_s1, %s253_s18  ;;  %p257_p1 = scmp.lt.u32.totalorder %s253_s18, %s433_s1 }
   0x7   :  { %p259_p2 = pnand %p257_p1, %p254_p0 }
   0x9   :  { %262 = shalt.err (!%p259_p2)
}
   0xa   :  { %s263_s23 = scalar_lea.vmem %s29_s13, 1024  ;;  %p268_p4 = scmp.lt.s32.totalorder %s29_s13, %s29_s13 }
   0xb   :  { %p264_p3 = scmp.ne.s32.totalorder %s29_s13, %s263_s23  ;;  %p269_p5 = scmp.lt.s32.totalorder %s263_s23, %s263_s23 }
   0xd   :  { %p270_p6 = por %p269_p5, %p268_p4 }
   0xf   :  { %p271_p7 = pnand %p270_p6, %p264_p3 }
  0x11   :  { %274 = shalt.err (!%p271_p7)
}
  0x12   :  { %s349_s24 = smov 64   ;;  %s350_s25 = smov 4  }
  0x13   :  { %34 = dma.hbm_to_vmem [thread:$0]  %s433_s1, 1024, %s29_s13, [#allocation6], %s349_s24, %s349_s24, %s350_s25  }
  0x14   :  { %s275_s30 = scalar_lea.hbm %s432_s0, 128 }
  0x15   :  { %p276_p8 = scmp.ne.s32.totalorder %s432_s0, %s275_s30  ;;  %p279_p9 = scmp.lt.u32.totalorder %s275_s30, %s432_s0 }
  0x17   :  { %p281_p10 = pnand %p279_p9, %p276_p8 }
  0x19   :  { %284 = shalt.err (!%p281_p10)
}
  0x1a   :  { %s285_s8 = scalar_lea.vmem %s377_s15, 128  ;;  %p290_p12 = scmp.lt.s32.totalorder %s377_s15, %s377_s15 }
  0x1b   :  { %p286_p11 = scmp.ne.s32.totalorder %s377_s15, %s285_s8  ;;  %p291_p13 = scmp.lt.s32.totalorder %s285_s8, %s285_s8 }
  0x1d   :  { %p292_p0 = por %p291_p13, %p290_p12 }
  0x1f   :  { %p293_p1 = pnand %p292_p0, %p286_p11 }
  0x21   :  { %296 = shalt.err (!%p293_p1)
}
  0x22   :  { %22 = dma.hbm_to_vmem [thread:$0]  %s432_s0, 128, %s377_s15, [#allocation3], %s349_s24, %s349_s24, %s350_s25  }
  0x23   :  { %s351_s10 = smov [#allocation7]   ;;  %s297_s14 = scalar_lea.hbm %s434_s2, 16 }
  0x24   :  { %s41_s11 = sshll.u32 %s351_s10, 4  ;;  %p298_p2 = scmp.ne.s32.totalorder %s434_s2, %s297_s14  ;;  %s42_s11 = int_to_ptr.vmem [resolvable:$true] %s41_s11 }
  0x25   :  { %p301_p3 = scmp.lt.u32.totalorder %s297_s14, %s434_s2 }
  0x27   :  { %p303_p4 = pnand %p301_p3, %p298_p2 }
  0x29   :  { %306 = shalt.err (!%p303_p4)
}
  0x2a   :  { %s307_s20 = scalar_lea.vmem %s42_s11, 16  ;;  %s311_s0 = scalar_lea.vmem %s42_s11, 32 }
  0x2b   :  { %p308_p5 = scmp.ne.s32.totalorder %s42_s11, %s307_s20  ;;  %p312_p6 = scmp.lt.s32.totalorder %s42_s11, %s42_s11 }
  0x2c   :  { %p313_p7 = scmp.lt.s32.totalorder %s311_s0, %s307_s20 }
  0x2e   :  { %p314_p8 = por %p313_p7, %p312_p6 }
  0x30   :  { %p315_p9 = pnand %p314_p8, %p308_p5 }
  0x32   :  { %318 = shalt.err (!%p315_p9)
}
  0x33   :  { %44 = dma.hbm_to_vmem [thread:$0]  %s434_s2, 16, %s42_s11, [#allocation6]  }
  0x34   :  { %341 = dma.done.wait [#allocation3], 128  }
  0x35   :  { %342 = vsyncadd [#allocation3], 4294967168 }
  0x36   :  { %343 = dma.done.wait [#allocation6], 1040  }
  0x37   :  { %344 = vsyncadd [#allocation6], 4294966256  ;;  %v352_v0 = vmov 0.0   ;;  %vm353_vm0 = vmmov 0   ;;  %v244_v1 = vld [vmem:[#allocation5] sm:$0xff]   ;;  %v245_v2 = vld [vmem:[#allocation5 + $0x8] sm:$0xff]  }
  0x38   :  { %214 = vmatprep.subr.bf16.mxu0 %v352_v0  ;;  %230 = vmatprep.mubr.msk.bf16.mxu0 %vm353_vm0, %v352_v0  ;;  %v246_v3 = vld [vmem:[#allocation5 + $0x10] sm:$0xff]   ;;  %v247_v4 = vld [vmem:[#allocation5 + $0x18] sm:$0xff]   ;;  %v248_v5 = vld [vmem:[#allocation5 + $0x20] sm:$0xff]   ;;  %s354_s2 = smov [#allocation8]  }
  0x39   :  { %215 = vmatpush3.bf16.msra.mxu0 %v244_v1  ;;  %v249_v6 = vld [vmem:[#allocation5 + $0x28] sm:$0xff]   ;;  %v250_v7 = vld [vmem:[#allocation5 + $0x30] sm:$0xff]   ;;  %v251_v8 = vld [vmem:[#allocation5 + $0x38] sm:$0xff]   ;;  %s182_s22 = sshll.u32 %s354_s2, 4  ;;  %s183_s22 = int_to_ptr.vmem [resolvable:$true] %s182_s22 }
  0x3a   :  { %216 = vmatprep.subr.bf16.mxu0 %v352_v0  ;;  %v252_v9 = vld [vmem:[#allocation2] sm:$0xff]   ;;  %v195_v10 = vld [vmem:[#allocation7] ss:$0 sm:$0xff]  ;;  %s319_s23 = scalar_lea.vmem %s183_s22, 256  ;;  %p324_p11 = scmp.lt.s32.totalorder %s183_s22, %s183_s22 }
  0x3b   :  { %p320_p10 = scmp.ne.s32.totalorder %s183_s22, %s319_s23  ;;  %p325_p12 = scmp.lt.s32.totalorder %s319_s23, %s319_s23 }
  0x3d   :  { %217 = vmatpush3.bf16.msra.mxu0 %v245_v2  ;;  %p326_p13 = por %p325_p12, %p324_p11 }
  0x3e   :  { %218 = vmatprep.subr.bf16.mxu0 %v352_v0 }
  0x3f   :  { %p327_p0 = pnand %p326_p13, %p320_p10 }
  0x41   :  { %219 = vmatpush3.bf16.msra.mxu0 %v246_v3 }
  0x42   :  { %220 = vmatprep.subr.bf16.mxu0 %v352_v0 }
  0x45   :  { %221 = vmatpush3.bf16.msra.mxu0 %v247_v4 }
  0x46   :  { %222 = vmatprep.subr.bf16.mxu0 %v352_v0 }
  0x49   :  { %223 = vmatpush3.bf16.msra.mxu0 %v248_v5 }
  0x4a   :  { %224 = vmatprep.subr.bf16.mxu0 %v352_v0 }
  0x4d   :  { %225 = vmatpush3.bf16.msra.mxu0 %v249_v6 }
  0x4e   :  { %226 = vmatprep.subr.bf16.mxu0 %v352_v0 }
  0x51   :  { %227 = vmatpush3.bf16.msra.mxu0 %v250_v7 }
  0x52   :  { %228 = vmatprep.subr.bf16.mxu0 %v352_v0 }
  0x55   :  { %229 = vmatpush3.bf16.msra.mxu0 %v251_v8 }
  0x58   :  { %231 = vmatmul.mubr.bf16.vlgmr.msra.gmra.mrb[0].mxu0 %v252_v9 }
 0x12b   :  { %v168_v11 = vpop.f32.mrb[0].mxu0 }
 0x12c   :  { %v169_v12 = vadd.f32 %v195_v10, %v168_v11  ;;  %v232_v13 = vpop.f32.mrb[1].mxu0 }
 0x12d   :  { %v171_v14 = vpop.f32.mrb[2].mxu0 }
 0x12e   :  { %175 = vst [vmem:[#allocation8] sm:$0xff] %v169_v12  ;;  %v172_v15 = vadd.f32 %v195_v10, %v171_v14  ;;  %v233_v16 = vpop.f32.mrb[3].mxu0 }
 0x130   :  { %176 = vst [vmem:[#allocation8 + $0x8] sm:$0xff] %v172_v15 }
 0x131   :  { %330 = shalt.err (!%p327_p0)
}
 0x132   :  { %s331_s26 = scalar_lea.hbm %s435_s3, 256 }
 0x133   :  { %p332_p1 = scmp.ne.s32.totalorder %s435_s3, %s331_s26  ;;  %p335_p2 = scmp.lt.u32.totalorder %s331_s26, %s435_s3 }
 0x135   :  { %p337_p3 = pnand %p335_p2, %p332_p1 }
 0x137   :  { %340 = shalt.err (!%p337_p3)
}
 0x138   :  { %s355_s4 = smov 128   ;;  %s356_s5 = smov 8  }
 0x139   :  { %188 = dma.vmem_to_hbm [thread:$0]  %s183_s22, 256, %s435_s3, [#allocation4], %s355_s4, %s355_s4, %s356_s5  }
 0x13a   :  { %345 = dma.done.wait [#allocation4], 256  }
 0x13b   :  { %346 = vsyncadd [#allocation4], 4294967040 }
 0x13c   :  { %192 = vsyncpa [#allocation3], 1 }
 0x13d   :  { %193 = vsyncpa [#allocation6], 1 }
 0x13e   :  { %194 = vsyncpa [#allocation4], 1 }

</bundles_post_ra>
